<compile_context>
chip_gen: v7x
topology: tpu7x:2x2x1
jax: 0.10.0
libtpu: 0.0.40
codegen_flags: <defaults>
</compile_context>

<pallas_src>
import functools

import jax
import jax.numpy as jnp
from jax.experimental import pallas as pl
from jax.experimental.pallas import tpu as pltpu


# ----------------------------------------------------------------------------
# helpers / tunables
# ----------------------------------------------------------------------------
def _round_up(a, b):
    return ((a + b - 1) // b) * b


def _sublane_tile(dtype):
    # rows-per-tile for the table's dtype (f32: 8, bf16/f16: 16, int8/fp8: 32)
    return {4: 8, 2: 16, 1: 32}.get(jnp.dtype(dtype).itemsize, 8)


def _vmem_capacity_bytes():
    """Physical per-TensorCore VMEM (v5e/v6e: 128 MiB, v7x: 64 MiB)."""
    try:
        return int(pltpu.get_tpu_info().vmem_capacity_bytes)
    except Exception:
        return 64 << 20  # conservative fallback = smallest current generation


_ONEHOT_K_CHUNK = 512     # vocabulary chunk size for the one-hot contraction
_GATHER_WAVE = 32         # in-flight row DMAs in the gather kernel (power of 2)
_GATHER_MAX_ROWS = 1 << 17  # SMEM budget for scalar-prefetched index arrays
_VMEM_SLACK = 4 << 20     # slack added to every VMEM estimate


# ----------------------------------------------------------------------------
# Path 1: one-hot matmul (table resident in VMEM) -- small vocabularies
# ----------------------------------------------------------------------------
def _make_onehot_kernel(k_chunk, num_chunks):
    if num_chunks == 1:

        def kernel(idx_ref, table_ref, out_ref):
            # idx_ref   : (block_n, 1)          int32
            # table_ref : (no_cat_p, d_block)   table dtype (full padded table)
            # out_ref   : (block_n, d_block)
            block_n = idx_ref.shape[0]
            idx = idx_ref[...]
            cats = jax.lax.broadcasted_iota(jnp.int32, (block_n, k_chunk), 1)
            onehot = (idx == cats).astype(table_ref.dtype)      # exact 0/1
            out_ref[...] = jnp.dot(
                onehot, table_ref[...], preferred_element_type=jnp.float32
            ).astype(out_ref.dtype)

        return kernel

    def kernel(idx_ref, table_ref, out_ref, acc_ref):
        # k-chunked contraction: bounds the onehot/iota live intermediates to
        # (block_n, k_chunk) instead of (block_n, no_cat).
        block_n = idx_ref.shape[0]
        idx = idx_ref[...]
        acc_ref[...] = jnp.zeros_like(acc_ref)

        def body(c, carry):
            start = pl.multiple_of(c * k_chunk, k_chunk)
            cats = (
                jax.lax.broadcasted_iota(jnp.int32, (block_n, k_chunk), 1) + start
            )
            onehot = (idx == cats).astype(table_ref.dtype)      # exact 0/1
            acc_ref[...] += jnp.dot(
                onehot,
                table_ref[pl.ds(start, k_chunk), :],
                preferred_element_type=jnp.float32,
            )
            return carry

        jax.lax.fori_loop(0, num_chunks, body, 0, unroll=num_chunks <= 4)
        out_ref[...] = acc_ref[...].astype(out_ref.dtype)

    return kernel


def _embed_onehot(idx, table, block_n, vmem_cap):
    n = idx.shape[0]
    no_cat, embed_dim = table.shape
    dtype = table.dtype
    itemsize = jnp.dtype(dtype).itemsize

    # lane-dense output blocks: pad embed_dim to a multiple of 128
    d_block = max(128, _round_up(embed_dim, 128))
    # vocabulary padded to the sublane tile (and to the K chunk when chunking);
    # pad rows are zero and are never selected by valid indices.
    if no_cat > _ONEHOT_K_CHUNK:
        no_cat_p = _round_up(no_cat, _ONEHOT_K_CHUNK)
    else:
        no_cat_p = _round_up(no_cat, _sublane_tile(dtype))
    k_chunk = min(no_cat_p, _ONEHOT_K_CHUNK)
    num_chunks = no_cat_p // k_chunk

    table_p = table
    if (no_cat_p, d_block) != (no_cat, embed_dim):
        table_p = jnp.pad(table, ((0, no_cat_p - no_cat), (0, d_block - embed_dim)))

    table_bytes = no_cat_p * d_block * itemsize

    # per-row VMEM cost of a block (idx blocks are lane-padded to 128 lanes!)
    per_row = (
        2 * 128 * 4                                # (block_n,1) int32, 2 buffers
        + 2 * d_block * itemsize                   # output block, 2 buffers
        + (d_block * 4 if num_chunks > 1 else 0)   # f32 accumulator scratch
        + k_chunk * (8 + itemsize)                 # iota + cmp + onehot temps
    )

    if block_n is None:
        # adaptive block_n: fill leftover per-TC VMEM after the table
        # (reserve 2x the table so a double-buffered fallback still fits).
        budget = vmem_cap - _VMEM_SLACK - 2 * table_bytes
        block_n = budget // per_row if budget > 0 else 256
        block_n = int(max(256, min(block_n, 2048)))
    block_n = max(16, _round_up(int(block_n), 16))   # bf16-tile-legal rows
    block_n = min(block_n, _round_up(n, 16))         # don't over-pad tiny inputs

    n_pad = _round_up(n, block_n)
    if n_pad != n:
        idx = jnp.pad(idx, (0, n_pad - n))           # pad rows -> row 0, sliced off
    idx2 = idx.reshape(n_pad, 1)

    grid = (n_pad // block_n,)

    # VMEM estimate is per TensorCore (megacore: each TC holds its own table);
    # counted with a double-buffered table so a Buffered(1) fallback still fits.
    vmem_need = 2 * table_bytes + block_n * per_row + _VMEM_SLACK
    compiler_params = pltpu.CompilerParams(
        dimension_semantics=("parallel",),
        vmem_limit_bytes=int(min(max(vmem_need, 32 << 20), vmem_cap)),
    )
    cost = pl.CostEstimate(
        flops=2 * n_pad * no_cat_p * d_block,
        transcendentals=0,
        bytes_accessed=n_pad * 4
        + n_pad * d_block * itemsize
        + no_cat_p * d_block * itemsize,
    )

    kernel = _make_onehot_kernel(k_chunk, num_chunks)
    scratch = (
        [pltpu.VMEM((block_n, d_block), jnp.float32)] if num_chunks > 1 else []
    )

    def run(table_buffers):
        if table_buffers == 1:
            # grid-invariant table block: single-buffer it (halves residency,
            # no pipelining benefit is lost).
            table_spec = pl.BlockSpec(
                (no_cat_p, d_block), lambda i: (0, 0), pipeline_mode=pl.Buffered(1)
            )
        else:
            table_spec = pl.BlockSpec((no_cat_p, d_block), lambda i: (0, 0))
        return pl.pallas_call(
            kernel,
            out_shape=jax.ShapeDtypeStruct((n_pad, d_block), dtype),
            grid_spec=pltpu.PrefetchScalarGridSpec(
                num_scalar_prefetch=0,
                grid=grid,
                in_specs=[
                    pl.BlockSpec((block_n, 1), lambda i: (i, 0)),   # indices
                    table_spec,                                      # full table
                ],
                out_specs=pl.BlockSpec((block_n, d_block), lambda i: (i, 0)),
                scratch_shapes=scratch,
            ),
            compiler_params=compiler_params,
            cost_estimate=cost,
        )(idx2, table_p)

    try:
        out = run(1)          # single-buffered (default)
    except Exception:
        out = run(2)          # fallback if Buffered(1) is not supported

    if n_pad != n or d_block != embed_dim:
        out = out[:n, :embed_dim]
    return out


# ----------------------------------------------------------------------------
# Path 2: DMA row gather (table stays in HBM) -- large vocabularies
# ----------------------------------------------------------------------------
def _gather_kernel(idx_ref, table_hbm, out_ref, buf_ref, sem, *, no_cat):
    # idx_ref   : (n_pad,) int32 in SMEM (scalar prefetch)
    # table_hbm : (no_cat, embed_dim) in HBM (pl.ANY) -- never copied wholesale
    # out_ref   : (block_n, embed_dim) VMEM output block
    # buf_ref   : (block_n, embed_dim) VMEM gather landing buffer
    # sem       : (_GATHER_WAVE,) DMA semaphores
    block_n = out_ref.shape[0]
    base = pl.program_id(0) * block_n
    nw = min(_GATHER_WAVE, block_n)      # in-flight row DMAs (power of two)

    def row_copy(r, src_row):
        return pltpu.make_async_copy(
            table_hbm.at[pl.ds(src_row, 1), :],
            buf_ref.at[pl.ds(r, 1), :],
            sem.at[r & (nw - 1)],
        )

    def issue(r):
        row = jnp.clip(idx_ref[base + r], 0, no_cat - 1)   # OOB ids clamp
        row_copy(r, row).start()

    def drain(r):
        row_copy(r, 0).wait()            # shape/dst/sem determine the wait

    @pl.loop(0, nw)                      # prime the wave
    def _(r):
        issue(r)

    @pl.loop(nw, block_n)                # steady state: free a slot, reuse it
    def _(r):
        drain(r - nw)
        issue(r)

    @pl.loop(block_n - nw, block_n)      # drain the tail
    def _(r):
        drain(r)

    out_ref[...] = buf_ref[...]
    # TODO(synk): DMA directly into out_ref (skip the landing-buffer copy) once
    # direct manual DMAs into pipelined output blocks are exercised/validated.


def _embed_gather(idx, table, block_n, vmem_cap):
    n = idx.shape[0]
    no_cat, embed_dim = table.shape
    dtype = table.dtype
    itemsize = jnp.dtype(dtype).itemsize

    if n > _GATHER_MAX_ROWS:
        # keep the scalar-prefetched index array within the SMEM budget
        parts = [
            _embed_gather(idx[s : s + _GATHER_MAX_ROWS], table, block_n, vmem_cap)
            for s in range(0, n, _GATHER_MAX_ROWS)
        ]
        return jnp.concatenate(parts, axis=0)

    if block_n is None:
        block_n = 512
    block_n = max(16, _round_up(int(block_n), 16))
    block_n = min(block_n, _round_up(n, 16))
    n_pad = _round_up(n, block_n)
    if n_pad != n:
        idx = jnp.pad(idx, (0, n_pad - n))

    grid = (n_pad // block_n,)

    lane_bytes = block_n * max(128, _round_up(embed_dim, 128)) * itemsize
    vmem_need = 3 * lane_bytes + _VMEM_SLACK     # 2 out buffers + landing buffer
    compiler_params = pltpu.CompilerParams(
        dimension_semantics=("parallel",),
        vmem_limit_bytes=int(min(max(vmem_need, 32 << 20), vmem_cap)),
    )
    cost = pl.CostEstimate(
        flops=0,
        transcendentals=0,
        bytes_accessed=n_pad * 4 + 2 * n_pad * embed_dim * itemsize,
    )

    out = pl.pallas_call(
        functools.partial(_gather_kernel, no_cat=no_cat),
        out_shape=jax.ShapeDtypeStruct((n_pad, embed_dim), dtype),
        grid_spec=pltpu.PrefetchScalarGridSpec(
            num_scalar_prefetch=1,                       # indices -> SMEM
            grid=grid,
            in_specs=[pl.BlockSpec(memory_space=pl.ANY)],  # table stays in HBM
            out_specs=pl.BlockSpec((block_n, embed_dim), lambda i, idx_ref: (i, 0)),
            scratch_shapes=[
                pltpu.VMEM((block_n, embed_dim), dtype),
                pltpu.SemaphoreType.DMA((_GATHER_WAVE,)),
            ],
        ),
        compiler_params=compiler_params,
        cost_estimate=cost,
    )(idx, table)

    if n_pad != n:
        out = out[:n]
    return out


# ----------------------------------------------------------------------------
# public wrapper (dispatch)
# ----------------------------------------------------------------------------
def categorical_embedding(x, table, *, block_n=None, method="auto"):
    """Pallas equivalent of CategoricalEmbedding.forward(x) == table[x].

    method: "auto" (default), "onehot", or "gather".
    """
    orig_shape = x.shape
    no_cat, embed_dim = table.shape
    itemsize = jnp.dtype(table.dtype).itemsize

    idx = x.reshape(-1).astype(jnp.int32)
    vmem_cap = _vmem_capacity_bytes()        # per-TensorCore budget

    if method == "auto":
        # One-hot costs 2*no_cat flops per output element: it flips from
        # HBM-bound to MXU-bound around ~2K categories for bf16 tables and
        # ~3x earlier for f32 (MXU multi-pass penalty).  Beyond that -- or if
        # the table cannot sit in VMEM next to the row blocks -- gather at
        # HBM bandwidth instead.
        threshold = 2048 if itemsize <= 2 else 1024
        d_block = max(128, _round_up(embed_dim, 128))
        table_vmem = _round_up(no_cat, 8) * d_block * itemsize
        fits = table_vmem <= max(vmem_cap // 2, vmem_cap - (16 << 20))
        method = "onehot" if (no_cat <= threshold and fits) else "gather"

    if method == "onehot":
        out = _embed_onehot(idx, table, block_n, vmem_cap)
    elif method == "gather":
        out = _embed_gather(idx, table, block_n, vmem_cap)
    else:
        raise ValueError(f"unknown method: {method!r}")

    return out.reshape(*orig_shape, embed_dim)


# ----------------------------------------------------------------------------
# self-test
# ----------------------------------------------------------------------------
if __name__ == "__main__":
    keys = jax.random.split(jax.random.PRNGKey(0), 10)

    # case 1: module-sized example (no_cat=16, embed_dim=32, x=(2, 8)), f32
    table = jax.random.normal(keys[0], (16, 32), dtype=jnp.float32)
    x = jax.random.randint(keys[1], (2, 8), 0, 16, dtype=jnp.int32)
    out = jax.block_until_ready(categorical_embedding(x, table))
    ref = jnp.take(table, x, axis=0)
    assert out.shape == (2, 8, 32) and out.dtype == jnp.float32
    assert jnp.array_equal(out, ref), "case 1 (one-hot) mismatch"

    # case 2: multi-block grid with row padding (explicit block_n)
    table2 = jax.random.normal(keys[2], (24, 32), dtype=jnp.float32)
    x2 = jax.random.randint(keys[3], (3, 300), 0, 24, dtype=jnp.int32)
    out2 = jax.block_until_ready(categorical_embedding(x2, table2, block_n=256))
    assert out2.shape == (3, 300, 32)
    assert jnp.array_equal(out2, jnp.take(table2, x2, axis=0)), "case 2 mismatch"

    # case 3: bf16 table (sublane-tile padding / tile-legal blocks)
    table3 = jax.random.normal(keys[4], (16, 32), dtype=jnp.bfloat16)
    x3 = jax.random.randint(keys[5], (2, 8), 0, 16, dtype=jnp.int32)
    out3 = jax.block_until_ready(categorical_embedding(x3, table3))
    assert out3.dtype == jnp.bfloat16
    assert jnp.array_equal(out3, jnp.take(table3, x3, axis=0)), "case 3 mismatch"

    # case 4: k-chunked one-hot contraction (no_cat > K chunk, below threshold)
    table4 = jax.random.normal(keys[6], (800, 32), dtype=jnp.float32)
    x4 = jax.random.randint(keys[7], (4, 64), 0, 800, dtype=jnp.int32)
    out4 = jax.block_until_ready(categorical_embedding(x4, table4))
    assert jnp.array_equal(out4, jnp.take(table4, x4, axis=0)), "case 4 mismatch"

    # case 5: large vocabulary -> DMA row-gather path
    table5 = jax.random.normal(keys[8], (4096, 64), dtype=jnp.float32)
    x5 = jax.random.randint(keys[9], (4, 200), 0, 4096, dtype=jnp.int32)
    out5 = jax.block_until_ready(categorical_embedding(x5, table5))
    assert out5.shape == (4, 200, 64)
    assert jnp.array_equal(out5, jnp.take(table5, x5, axis=0)), "case 5 (gather) mismatch"

    print("KERNEL_OK")
</pallas_src>

<mosaic_0001>
module attributes {stable_mosaic.version = 11 : i64} {
  func.func @kernel(%arg0: i32, %arg1: memref<16x1xi32, #tpu.memory_space<vmem>>, %arg2: memref<16x128xf32, #tpu.memory_space<vmem>>, %arg3: memref<16x128xf32, #tpu.memory_space<vmem>>) attributes {dimension_semantics = [#tpu.dimension_semantics<parallel>], iteration_bounds = array<i64: 1>, scalar_prefetch = 0 : i64, scratch_operands = 0 : i64, tpu.core_type = #tpu.core_type<tc>, window_params = [{transform_indices = @transform_0, window_bounds = array<i64: 16, 1>}, {pipeline_mode = #tpu.pipeline_mode<synchronous>, transform_indices = @transform_1, window_bounds = array<i64: 16, 128>}, {transform_indices = @transform_2, window_bounds = array<i64: 16, 128>}]} {
    %c0 = arith.constant 0 : index
    %c0_0 = arith.constant 0 : index
    %0 = vector.load %arg1[%c0, %c0_0] : memref<16x1xi32, #tpu.memory_space<vmem>>, vector<16x1xi32>
    %1 = tpu.iota {dimensions = array<i32: 1>} : vector<16x16xi32>
    %2 = vector.broadcast %0 : vector<16x1xi32> to vector<16x16xi32>
    %3 = arith.cmpi eq, %2, %1 : vector<16x16xi32>
    %4 = arith.extui %3 : vector<16x16xi1> to vector<16x16xi32>
    %5 = arith.sitofp %4 : vector<16x16xi32> to vector<16x16xf32>
    %c0_1 = arith.constant 0 : index
    %c0_2 = arith.constant 0 : index
    %6 = vector.load %arg2[%c0_1, %c0_2] : memref<16x128xf32, #tpu.memory_space<vmem>>, vector<16x128xf32>
    %cst = arith.constant dense<0.000000e+00> : vector<16x128xf32>
    %7 = tpu.matmul %5, %6, %cst {dimension_numbers = #tpu.dot_dimension_numbers<[1], [0], [0], [1], [0, 0, 1, 1], [], []>} : vector<16x16xf32>, vector<16x128xf32>, vector<16x128xf32> -> vector<16x128xf32>
    %c0_3 = arith.constant 0 : index
    %c0_4 = arith.constant 0 : index
    %8 = vector.load %arg3[%c0_3, %c0_4] : memref<16x128xf32, #tpu.memory_space<vmem>>, vector<16x128xf32>
    tpu.vector_store %arg3[%c0_3, %c0_4], %7 {strides = array<i32>} : memref<16x128xf32, #tpu.memory_space<vmem>>, vector<16x128xf32>,
    return
  }
  func.func @transform_0(%arg0: i32) -> (i32, i32) {
    %c0_i32 = arith.constant 0 : i32
    %c0_i32_0 = arith.constant 0 : i32
    return %arg0, %c0_i32 : i32, i32
  }
  func.func @transform_1(%arg0: i32) -> (i32, i32) {
    %c0_i32 = arith.constant 0 : i32
    %c0_i32_0 = arith.constant 0 : i32
    %c0_i32_1 = arith.constant 0 : i32
    return %c0_i32, %c0_i32_0 : i32, i32
  }
  func.func @transform_2(%arg0: i32) -> (i32, i32) {
    %c0_i32 = arith.constant 0 : i32
    %c0_i32_0 = arith.constant 0 : i32
    return %arg0, %c0_i32 : i32, i32
  }
}

module attributes {stable_mosaic.version = 11 : i64} {
  func.func @kernel(%arg0: i32, %arg1: memref<16x1xi32, #tpu.memory_space<vmem>>, %arg2: memref<16x128xf32, #tpu.memory_space<vmem>>, %arg3: memref<16x128xf32, #tpu.memory_space<vmem>>) attributes {dimension_semantics = [#tpu.dimension_semantics<parallel>], iteration_bounds = array<i64: 1>, scalar_prefetch = 0 : i64, scratch_operands = 0 : i64, tpu.core_type = #tpu.core_type<tc>, window_params = [{transform_indices = @transform_0, window_bounds = array<i64: 16, 1>}, {pipeline_mode = #tpu.pipeline_mode<synchronous>, transform_indices = @transform_1, window_bounds = array<i64: 16, 128>}, {transform_indices = @transform_2, window_bounds = array<i64: 16, 128>}]} {
    %c0 = arith.constant 0 : index
    %c0_0 = arith.constant 0 : index
    %0 = vector.load %arg1[%c0, %c0_0] : memref<16x1xi32, #tpu.memory_space<vmem>>, vector<16x1xi32>
    %1 = tpu.iota {dimensions = array<i32: 1>} : vector<16x16xi32>
    %2 = vector.broadcast %0 : vector<16x1xi32> to vector<16x16xi32>
    %3 = arith.cmpi eq, %2, %1 : vector<16x16xi32>
    %4 = arith.extui %3 : vector<16x16xi1> to vector<16x16xi32>
    %5 = arith.sitofp %4 : vector<16x16xi32> to vector<16x16xf32>
    %c0_1 = arith.constant 0 : index
    %c0_2 = arith.constant 0 : index
    %6 = vector.load %arg2[%c0_1, %c0_2] : memref<16x128xf32, #tpu.memory_space<vmem>>, vector<16x128xf32>
    %cst = arith.constant dense<0.000000e+00> : vector<16x128xf32>
    %7 = tpu.matmul %5, %6, %cst {dimension_numbers = #tpu.dot_dimension_numbers<[1], [0], [0], [1], [0, 0, 1, 1], [], []>} : vector<16x16xf32>, vector<16x128xf32>, vector<16x128xf32> -> vector<16x128xf32>
    %c0_3 = arith.constant 0 : index
    %c0_4 = arith.constant 0 : index
    %8 = vector.load %arg3[%c0_3, %c0_4] : memref<16x128xf32, #tpu.memory_space<vmem>>, vector<16x128xf32>
    tpu.vector_store %arg3[%c0_3, %c0_4], %7 {strides = array<i32>} : memref<16x128xf32, #tpu.memory_space<vmem>>, vector<16x128xf32>,
    return
  }
  func.func @transform_0(%arg0: i32) -> (i32, i32) {
    %c0_i32 = arith.constant 0 : i32
    %c0_i32_0 = arith.constant 0 : i32
    return %arg0, %c0_i32 : i32, i32
  }
  func.func @transform_1(%arg0: i32) -> (i32, i32) {
    %c0_i32 = arith.constant 0 : i32
    %c0_i32_0 = arith.constant 0 : i32
    %c0_i32_1 = arith.constant 0 : i32
    return %c0_i32, %c0_i32_0 : i32, i32
  }
  func.func @transform_2(%arg0: i32) -> (i32, i32) {
    %c0_i32 = arith.constant 0 : i32
    %c0_i32_0 = arith.constant 0 : i32
    return %arg0, %c0_i32 : i32, i32
  }
}

</mosaic_0001>

<bundles_post_ra>
// kernel: tpu_custom_call.1
= control target key start
LH: loop header
LB: loop body
LE: loop exit
PB: predicated region body
PF: predicated region fallthrough
CT: control target
= control target key end

     0   :  { %s223_s0 = inlined_call_operand.vmem [shape: s32[16,1], index: 0, kind: input, shape index: {}]   ;;  %s224_s1 = inlined_call_operand.vmem [shape: f32[16,128], index: 1, kind: input, shape index: {}]   ;;  %s225_s2 = inlined_call_operand.hbm [shape: f32[16,128], index: 2, kind: output, shape index: {}]  }
   0x1   :  { %v12_v0 = vld [vmem:[%s223_s0] sm:$0xff] }
   0x2   :  { %7 = vsyncpa [#allocation3], 0  ;;  %v179_v1 = vmov 0   ;;  %v28_v2 = vld [vmem:[%s224_s1] sm:$0xff]  ;;  %v29_v3 = vld [vmem:[%s224_s1 + $0x8] sm:$0xff]  ;;  %v14_v6 = vlaneseq  ;;  %vm30_vm0 = vcmask 130048  }
   0x3   :  { %154 = vset.pattern.permute.xlu0 %v179_v1  ;;  %v145_v4 = vpack.c.bf16 %v29_v3, %v28_v2  ;;  %v13_v5 = vld [vmem:[%s223_s0 + $0x8] sm:$0xff]  ;;  %v180_v9 = vmov 0.0   ;;  %s181_s1 = smov [#allocation2]  }
   0x4   :  { %17 = vperm.xlu0 %154, %v12_v0   ;;  %v15_v7 = vand.u32 127, %v14_v6  ;;  %s119_s17 = sshll.u32 %s181_s1, 4  ;;  %s120_s17 = int_to_ptr.vmem [resolvable:$true] %s119_s17 }
   0x5   :  { %146 = vmatprep.subr.bf16.mxu0 %v145_v4  ;;  %s155_s0 = scalar_lea.vmem %s120_s17, 256  ;;  %p160_p1 = scmp.lt.s32.totalorder %s120_s17, %s120_s17 }
   0x6   :  { %148 = vmatpush3.bf16.msra.mxu0 %v145_v4  ;;  %p156_p0 = scmp.ne.s32.totalorder %s120_s17, %s155_s0  ;;  %p161_p2 = scmp.lt.s32.totalorder %s155_s0, %s155_s0 }
   0x8   :  { %20 = vperm.xlu0 %154, %v13_v5   ;;  %p162_p3 = por %p161_p2, %p160_p1 }
   0xa   :  { %p163_p4 = pnand %p162_p3, %p156_p0 }
  0x83   :  { %v18_v8 = vpop.permute.xlu0 %17 }
  0x84   :  { %vm22_vm1 = vcmp.eq.s32.totalorder %v18_v8, %v15_v7 }
  0x85   :  { %v130_v10 = vsel %vm22_vm1, 1.0, %v180_v9 }
  0x86   :  { %142 = vmatprep.mubr.msk.f32.mxu0 %vm30_vm0, %v130_v10 }
  0x87   :  { %v21_v11 = vpop.permute.xlu0 %20 }
  0x88   :  { %vm23_vm2 = vcmp.eq.s32.totalorder %v21_v11, %v15_v7 }
  0x89   :  { %v131_v12 = vsel %vm23_vm2, 1.0, %v180_v9 }
  0x8a   :  { %143 = vmatmul.mubr.msk.f32.vlgmr.msra.gmra.mrb[0].mxu0 %vm30_vm0, %v131_v12 }
 0x15d   :  { %v144_v13 = vpop.f32.mrb[0].mxu0 }
 0x15e   :  { %113 = vst [vmem:[#allocation2 + $0x8] sm:$0xff] %v144_v13  ;;  %v103_v14 = vpop.f32.mrb[1].mxu0 }
 0x15f   :  { %112 = vst [vmem:[#allocation2] sm:$0xff] %v103_v14 }
 0x160   :  { %166 = shalt.err (!%p163_p4)
}
 0x161   :  { %s167_s20 = scalar_lea.hbm %s225_s2, 256 }
 0x162   :  { %p168_p5 = scmp.ne.s32.totalorder %s225_s2, %s167_s20  ;;  %p171_p6 = scmp.lt.u32.totalorder %s167_s20, %s225_s2 }
 0x164   :  { %p173_p7 = pnand %p171_p6, %p168_p5 }
 0x166   :  { %176 = shalt.err (!%p173_p7)
}
 0x167   :  { %s182_s25 = smov 128   ;;  %s183_s26 = smov 8  }
 0x168   :  { %125 = dma.vmem_to_hbm [thread:$0]  %s120_s17, 256, %s225_s2, [#allocation3], %s182_s25, %s182_s25, %s183_s26  }
 0x169   :  { %177 = dma.done.wait [#allocation3], 256  }
 0x16a   :  { %178 = vsyncadd [#allocation3], 4294967040 }
 0x16b   :  { %129 = vsyncpa [#allocation3], 1 }

// kernel: tpu_custom_call.1
= control target key start
LH: loop header
LB: loop body
LE: loop exit
PB: predicated region body
PF: predicated region fallthrough
CT: control target
= control target key end

     0   :  { %s223_s0 = inlined_call_operand.vmem [shape: s32[16,1], index: 0, kind: input, shape index: {}]   ;;  %s224_s1 = inlined_call_operand.vmem [shape: f32[16,128], index: 1, kind: input, shape index: {}]   ;;  %s225_s2 = inlined_call_operand.hbm [shape: f32[16,128], index: 2, kind: output, shape index: {}]  }
   0x1   :  { %v12_v0 = vld [vmem:[%s223_s0] sm:$0xff] }
   0x2   :  { %7 = vsyncpa [#allocation3], 0  ;;  %v179_v1 = vmov 0   ;;  %v28_v2 = vld [vmem:[%s224_s1] sm:$0xff]  ;;  %v29_v3 = vld [vmem:[%s224_s1 + $0x8] sm:$0xff]  ;;  %v14_v6 = vlaneseq  ;;  %vm30_vm0 = vcmask 130048  }
   0x3   :  { %154 = vset.pattern.permute.xlu0 %v179_v1  ;;  %v145_v4 = vpack.c.bf16 %v29_v3, %v28_v2  ;;  %v13_v5 = vld [vmem:[%s223_s0 + $0x8] sm:$0xff]  ;;  %v180_v9 = vmov 0.0   ;;  %s181_s1 = smov [#allocation2]  }
   0x4   :  { %17 = vperm.xlu0 %154, %v12_v0   ;;  %v15_v7 = vand.u32 127, %v14_v6  ;;  %s119_s17 = sshll.u32 %s181_s1, 4  ;;  %s120_s17 = int_to_ptr.vmem [resolvable:$true] %s119_s17 }
   0x5   :  { %146 = vmatprep.subr.bf16.mxu0 %v145_v4  ;;  %s155_s0 = scalar_lea.vmem %s120_s17, 256  ;;  %p160_p1 = scmp.lt.s32.totalorder %s120_s17, %s120_s17 }
   0x6   :  { %148 = vmatpush3.bf16.msra.mxu0 %v145_v4  ;;  %p156_p0 = scmp.ne.s32.totalorder %s120_s17, %s155_s0  ;;  %p161_p2 = scmp.lt.s32.totalorder %s155_s0, %s155_s0 }
   0x8   :  { %20 = vperm.xlu0 %154, %v13_v5   ;;  %p162_p3 = por %p161_p2, %p160_p1 }
   0xa   :  { %p163_p4 = pnand %p162_p3, %p156_p0 }
  0x83   :  { %v18_v8 = vpop.permute.xlu0 %17 }
  0x84   :  { %vm22_vm1 = vcmp.eq.s32.totalorder %v18_v8, %v15_v7 }
  0x85   :  { %v130_v10 = vsel %vm22_vm1, 1.0, %v180_v9 }
  0x86   :  { %142 = vmatprep.mubr.msk.f32.mxu0 %vm30_vm0, %v130_v10 }
  0x87   :  { %v21_v11 = vpop.permute.xlu0 %20 }
  0x88   :  { %vm23_vm2 = vcmp.eq.s32.totalorder %v21_v11, %v15_v7 }
  0x89   :  { %v131_v12 = vsel %vm23_vm2, 1.0, %v180_v9 }
  0x8a   :  { %143 = vmatmul.mubr.msk.f32.vlgmr.msra.gmra.mrb[0].mxu0 %vm30_vm0, %v131_v12 }
 0x15d   :  { %v144_v13 = vpop.f32.mrb[0].mxu0 }
 0x15e   :  { %113 = vst [vmem:[#allocation2 + $0x8] sm:$0xff] %v144_v13  ;;  %v103_v14 = vpop.f32.mrb[1].mxu0 }
 0x15f   :  { %112 = vst [vmem:[#allocation2] sm:$0xff] %v103_v14 }
 0x160   :  { %166 = shalt.err (!%p163_p4)
}
 0x161   :  { %s167_s20 = scalar_lea.hbm %s225_s2, 256 }
 0x162   :  { %p168_p5 = scmp.ne.s32.totalorder %s225_s2, %s167_s20  ;;  %p171_p6 = scmp.lt.u32.totalorder %s167_s20, %s225_s2 }
 0x164   :  { %p173_p7 = pnand %p171_p6, %p168_p5 }
 0x166   :  { %176 = shalt.err (!%p173_p7)
}
 0x167   :  { %s182_s25 = smov 128   ;;  %s183_s26 = smov 8  }
 0x168   :  { %125 = dma.vmem_to_hbm [thread:$0]  %s120_s17, 256, %s225_s2, [#allocation3], %s182_s25, %s182_s25, %s183_s26  }
 0x169   :  { %177 = dma.done.wait [#allocation3], 256  }
 0x16a   :  { %178 = vsyncadd [#allocation3], 4294967040 }
 0x16b   :  { %129 = vsyncpa [#allocation3], 1 }

</bundles_post_ra>
